<compile_context>
chip_gen: v6e
topology: v6e:2x2x1
jax: 0.10.0
libtpu: 0.0.40
codegen_flags: <defaults>
</compile_context>

<pallas_src>
import jax
import jax.numpy as jnp
from jax import lax
from jax.experimental import pallas as pl
from jax.experimental.pallas import tpu as pltpu

LANES = 128
SUBLANES = 8
MAX_ROW_TILE = 4096        # 4096 rows * 128 lanes * 4 B = 2 MiB per input block
NUM_CORES = 2              # split the reduction across 2 TCs on v7x


def _make_sums_kernel(rows, row_tile, tiles_per_core, needs_mask):
    """Builds the streaming-sums kernel with static parameters baked in."""

    def kernel(p_ref, g_ref, pg_ref, inter_ref):
        # Zero the per-core (1, 8, 128) accumulators at the first inner step.
        @pl.when(pl.program_id(1) == 0)
        def _():
            pg_ref[...] = jnp.zeros_like(pg_ref)
            inter_ref[...] = jnp.zeros_like(inter_ref)

        p = p_ref[...].astype(jnp.float32)
        g = g_ref[...].astype(jnp.float32)
        pg = p + g
        inter = p * g

        if needs_mask:
            # Logical tile index for this (core, step); dummy / partial tiles
            # get their out-of-range rows zeroed here (VPU compare + select,
            # fully hidden under the HBM-bound streaming).
            t = pl.program_id(0) * tiles_per_core + pl.program_id(1)
            row_base = t * row_tile
            row_idx = row_base + lax.broadcasted_iota(
                jnp.int32, (row_tile, LANES), 0)
            valid = row_idx < rows
            pg = jnp.where(valid, pg, 0.0)
            inter = jnp.where(valid, inter, 0.0)

        # Fold the tile into one (8, 128) vreg per quantity — pure VPU adds
        # along the sublane-major axis (layout-preserving reshape).  The
        # cross-lane/sublane reduce happens once, outside the kernel.
        pg_ref[...] += jnp.sum(pg.reshape(-1, SUBLANES, LANES), axis=0)[None]
        inter_ref[...] += jnp.sum(
            inter.reshape(-1, SUBLANES, LANES), axis=0)[None]

    return kernel


@jax.jit
def _soft_iou_sums(pred, gt):
    """Returns (sum(pred) + sum(gt), sum(pred * gt)) as float32 scalars."""
    p = pred.reshape(-1)
    g = gt.reshape(-1)
    n = p.shape[0]

    # Tiny or lane-unaligned inputs: plain-JAX sums (one read per input, no
    # padding copy).  The Pallas kernel targets the large, aligned case.
    if n % LANES != 0 or (n // LANES) < SUBLANES:
        pf = p.astype(jnp.float32)
        gf = g.astype(jnp.float32)
        return jnp.sum(pf) + jnp.sum(gf), jnp.sum(pf * gf)

    rows = n // LANES
    row_tile = min(MAX_ROW_TILE, (rows // SUBLANES) * SUBLANES)
    num_tiles = pl.cdiv(rows, row_tile)
    # Only split across cores when there is real work for both; otherwise a
    # dummy tile would re-read data just to throw it away.
    cores = NUM_CORES if num_tiles >= NUM_CORES else 1
    tiles_per_core = pl.cdiv(num_tiles, cores)
    needs_mask = (rows % row_tile != 0) or (num_tiles != tiles_per_core * cores)

    p2 = p.reshape(rows, LANES)   # free reshape of a contiguous array
    g2 = g.reshape(rows, LANES)

    if needs_mask:
        def in_map(c, i):
            # Clamp dummy tiles (past the end of the row range) onto the last
            # real tile; their contribution is zeroed by the in-kernel mask.
            return (jnp.minimum(c * tiles_per_core + i, num_tiles - 1), 0)
    else:
        def in_map(c, i):
            return (c * tiles_per_core + i, 0)

    kernel = _make_sums_kernel(rows, row_tile, tiles_per_core, needs_mask)

    pg_part, inter_part = pl.pallas_call(
        kernel,
        out_shape=(
            jax.ShapeDtypeStruct((cores, SUBLANES, LANES), jnp.float32),
            jax.ShapeDtypeStruct((cores, SUBLANES, LANES), jnp.float32),
        ),
        grid_spec=pltpu.PrefetchScalarGridSpec(
            num_scalar_prefetch=0,
            grid=(cores, tiles_per_core),
            in_specs=[
                pl.BlockSpec((row_tile, LANES), in_map),
                pl.BlockSpec((row_tile, LANES), in_map),
            ],
            out_specs=[
                pl.BlockSpec((1, SUBLANES, LANES), lambda c, i: (c, 0, 0)),
                pl.BlockSpec((1, SUBLANES, LANES), lambda c, i: (c, 0, 0)),
            ],
        ),
        compiler_params=pltpu.CompilerParams(
            dimension_semantics=("parallel", "arbitrary")),
    )(p2, g2)

    return jnp.sum(pg_part), jnp.sum(inter_part)


def _soft_iou_single(pred, gt):
    smooth = jnp.float32(1.0)
    s_pg, s_inter = _soft_iou_sums(pred, gt)
    loss = (s_inter + smooth) / (s_pg - s_inter + smooth)
    # loss is already a scalar, so the reference's .mean() is a no-op.
    return jnp.float32(1.0) - loss


def _max_pool_2x2_nchw(x):
    # MaxPool2d(2, 2) on NCHW, matching PyTorch (floor mode, no padding).
    return lax.reduce_window(
        x, -jnp.inf, lax.max,
        window_dimensions=(1, 1, 2, 2),
        window_strides=(1, 1, 2, 2),
        padding="VALID")


def soft_iou_loss(preds, gt_masks):
    """Pallas-backed equivalent of SoftIoULoss.forward."""
    if isinstance(preds, (list, tuple)):
        loss_total = jnp.float32(0.0)
        gt = gt_masks
        for i, pred in enumerate(preds):
            if i > 1:
                gt = _max_pool_2x2_nchw(gt)
            loss_total = loss_total + _soft_iou_single(pred, gt)
        return loss_total / jnp.float32(len(preds))
    return _soft_iou_single(preds, gt_masks)


# ---------------------- plain-JAX reference (for checks) --------------------
def _ref_single(pred, gt):
    inter = jnp.sum(pred * gt)
    return 1.0 - (inter + 1.0) / (jnp.sum(pred) + jnp.sum(gt) - inter + 1.0)


def _ref_loss(preds, gt):
    if isinstance(preds, (list, tuple)):
        total = 0.0
        g = gt
        for i, p in enumerate(preds):
            if i > 1:
                g = _max_pool_2x2_nchw(g)
            total = total + _ref_single(p, g)
        return total / len(preds)
    return _ref_single(preds, gt)


if __name__ == "__main__":
    key = jax.random.PRNGKey(0)
    k1, k2 = jax.random.split(key)

    # NCHW, small shapes (batch=2, channels=4, spatial=16).
    pred = jax.nn.sigmoid(jax.random.normal(k1, (2, 4, 16, 16), jnp.float32))
    gt = (jax.random.uniform(k2, (2, 4, 16, 16), jnp.float32) > 0.5).astype(
        jnp.float32)

    # Single-tensor branch (kernel path, 16 rows of 128 lanes, 1 tile/core).
    loss = jax.block_until_ready(soft_iou_loss(pred, gt))
    ref = _ref_single(pred, gt)
    assert jnp.allclose(loss, ref, rtol=1e-5, atol=1e-5), (loss, ref)

    # List branch (exercises the MaxPool path for i > 1 and the tiny-input
    # plain-JAX fallback for the strided pred).
    preds_list = [pred, pred * 0.5, pred[:, :, ::2, ::2]]
    loss_list = jax.block_until_ready(soft_iou_loss(preds_list, gt))
    ref_list = _ref_loss(preds_list, gt)
    assert jnp.allclose(loss_list, ref_list, rtol=1e-5, atol=1e-5), (
        loss_list, ref_list)

    # Larger non-tile-aligned case: 9600 rows with tile 4096 exercises the
    # multi-tile grid, the 2-core split, the dummy-tile clamp and the
    # in-kernel tail masking.
    k3, k4 = jax.random.split(k2)
    big_pred = jax.nn.sigmoid(
        jax.random.normal(k3, (1, 3, 640, 640), jnp.float32))
    big_gt = (jax.random.uniform(k4, (1, 3, 640, 640), jnp.float32)
              > 0.5).astype(jnp.float32)
    big_loss = jax.block_until_ready(soft_iou_loss(big_pred, big_gt))
    big_ref = _ref_single(big_pred, big_gt)
    assert jnp.allclose(big_loss, big_ref, rtol=1e-4, atol=1e-5), (
        big_loss, big_ref)

    print("KERNEL_OK")
</pallas_src>

<mosaic_0001>
module attributes {stable_mosaic.version = 11 : i64} {
  func.func @kernel(%arg0: i32, %arg1: i32, %arg2: memref<16x128xf32, #tpu.memory_space<vmem>>, %arg3: memref<16x128xf32, #tpu.memory_space<vmem>>, %arg4: memref<1x8x128xf32, #tpu.memory_space<vmem>>, %arg5: memref<1x8x128xf32, #tpu.memory_space<vmem>>) attributes {dimension_semantics = [#tpu.dimension_semantics<parallel>, #tpu.dimension_semantics<arbitrary>], iteration_bounds = array<i64: 1, 1>, scalar_prefetch = 0 : i64, scratch_operands = 0 : i64, tpu.core_type = #tpu.core_type<tc>, window_params = [{transform_indices = @transform_0, window_bounds = array<i64: 16, 128>}, {transform_indices = @transform_1, window_bounds = array<i64: 16, 128>}, {transform_indices = @transform_2, window_bounds = array<i64: 1, 8, 128>}, {transform_indices = @transform_3, window_bounds = array<i64: 1, 8, 128>}]} {
    %c0_i32 = arith.constant 0 : i32
    %0 = arith.cmpi eq, %arg1, %c0_i32 : i32
    %1 = arith.extui %0 : i1 to i32
    %c0_i32_0 = arith.constant 0 : i32
    %2 = arith.cmpi ne, %1, %c0_i32_0 : i32
    scf.if %2 {
      %cst_17 = arith.constant 0.000000e+00 : f32
      %19 = vector.broadcast %cst_17 : f32 to vector<1x8x128xf32>
      %c0_18 = arith.constant 0 : index
      %c0_19 = arith.constant 0 : index
      %c0_20 = arith.constant 0 : index
      %20 = vector.load %arg4[%c0_18, %c0_19, %c0_20] : memref<1x8x128xf32, #tpu.memory_space<vmem>>, vector<1x8x128xf32>
      tpu.vector_store %arg4[%c0_18, %c0_19, %c0_20], %19 {strides = array<i32>} : memref<1x8x128xf32, #tpu.memory_space<vmem>>, vector<1x8x128xf32>,
      %cst_21 = arith.constant 0.000000e+00 : f32
      %21 = vector.broadcast %cst_21 : f32 to vector<1x8x128xf32>
      %c0_22 = arith.constant 0 : index
      %c0_23 = arith.constant 0 : index
      %c0_24 = arith.constant 0 : index
      %22 = vector.load %arg5[%c0_22, %c0_23, %c0_24] : memref<1x8x128xf32, #tpu.memory_space<vmem>>, vector<1x8x128xf32>
      tpu.vector_store %arg5[%c0_22, %c0_23, %c0_24], %21 {strides = array<i32>} : memref<1x8x128xf32, #tpu.memory_space<vmem>>, vector<1x8x128xf32>,
    } else {
    }
    %c0 = arith.constant 0 : index
    %c0_1 = arith.constant 0 : index
    %3 = vector.load %arg2[%c0, %c0_1] : memref<16x128xf32, #tpu.memory_space<vmem>>, vector<16x128xf32>
    %c0_2 = arith.constant 0 : index
    %c0_3 = arith.constant 0 : index
    %4 = vector.load %arg3[%c0_2, %c0_3] : memref<16x128xf32, #tpu.memory_space<vmem>>, vector<16x128xf32>
    %5 = arith.addf %3, %4 : vector<16x128xf32>
    %6 = arith.mulf %3, %4 : vector<16x128xf32>
    %c0_4 = arith.constant 0 : index
    %c0_5 = arith.constant 0 : index
    %c0_6 = arith.constant 0 : index
    %7 = vector.load %arg4[%c0_4, %c0_5, %c0_6] : memref<1x8x128xf32, #tpu.memory_space<vmem>>, vector<1x8x128xf32>
    %8 = vector.shape_cast %5 : vector<16x128xf32> to vector<2x8x128xf32>
    %cst = arith.constant dense<0.000000e+00> : vector<8x128xf32>
    %9 = vector.multi_reduction <add>, %8, %cst [0] : vector<2x8x128xf32> to vector<8x128xf32>
    %10 = vector.shape_cast %9 : vector<8x128xf32> to vector<1x8x128xf32>
    %11 = arith.addf %7, %10 : vector<1x8x128xf32>
    %c0_7 = arith.constant 0 : index
    %c0_8 = arith.constant 0 : index
    %c0_9 = arith.constant 0 : index
    %12 = vector.load %arg4[%c0_7, %c0_8, %c0_9] : memref<1x8x128xf32, #tpu.memory_space<vmem>>, vector<1x8x128xf32>
    tpu.vector_store %arg4[%c0_7, %c0_8, %c0_9], %11 {strides = array<i32>} : memref<1x8x128xf32, #tpu.memory_space<vmem>>, vector<1x8x128xf32>,
    %c0_10 = arith.constant 0 : index
    %c0_11 = arith.constant 0 : index
    %c0_12 = arith.constant 0 : index
    %13 = vector.load %arg5[%c0_10, %c0_11, %c0_12] : memref<1x8x128xf32, #tpu.memory_space<vmem>>, vector<1x8x128xf32>
    %14 = vector.shape_cast %6 : vector<16x128xf32> to vector<2x8x128xf32>
    %cst_13 = arith.constant dense<0.000000e+00> : vector<8x128xf32>
    %15 = vector.multi_reduction <add>, %14, %cst_13 [0] : vector<2x8x128xf32> to vector<8x128xf32>
    %16 = vector.shape_cast %15 : vector<8x128xf32> to vector<1x8x128xf32>
    %17 = arith.addf %13, %16 : vector<1x8x128xf32>
    %c0_14 = arith.constant 0 : index
    %c0_15 = arith.constant 0 : index
    %c0_16 = arith.constant 0 : index
    %18 = vector.load %arg5[%c0_14, %c0_15, %c0_16] : memref<1x8x128xf32, #tpu.memory_space<vmem>>, vector<1x8x128xf32>
    tpu.vector_store %arg5[%c0_14, %c0_15, %c0_16], %17 {strides = array<i32>} : memref<1x8x128xf32, #tpu.memory_space<vmem>>, vector<1x8x128xf32>,
    return
  }
  func.func @transform_0(%arg0: i32, %arg1: i32) -> (i32, i32) {
    %c1_i32 = arith.constant 1 : i32
    %0 = arith.muli %arg0, %c1_i32 : i32
    %1 = arith.addi %0, %arg1 : i32
    %c0_i32 = arith.constant 0 : i32
    %c0_i32_0 = arith.constant 0 : i32
    return %1, %c0_i32 : i32, i32
  }
  func.func @transform_1(%arg0: i32, %arg1: i32) -> (i32, i32) {
    %c1_i32 = arith.constant 1 : i32
    %0 = arith.muli %arg0, %c1_i32 : i32
    %1 = arith.addi %0, %arg1 : i32
    %c0_i32 = arith.constant 0 : i32
    %c0_i32_0 = arith.constant 0 : i32
    return %1, %c0_i32 : i32, i32
  }
  func.func @transform_2(%arg0: i32, %arg1: i32) -> (i32, i32, i32) {
    %c0_i32 = arith.constant 0 : i32
    %c0_i32_0 = arith.constant 0 : i32
    %c0_i32_1 = arith.constant 0 : i32
    return %arg0, %c0_i32, %c0_i32_0 : i32, i32, i32
  }
  func.func @transform_3(%arg0: i32, %arg1: i32) -> (i32, i32, i32) {
    %c0_i32 = arith.constant 0 : i32
    %c0_i32_0 = arith.constant 0 : i32
    %c0_i32_1 = arith.constant 0 : i32
    return %arg0, %c0_i32, %c0_i32_0 : i32, i32, i32
  }
}

</mosaic_0001>

<bundles_post_ra>
// kernel: _soft_iou_sums.1
= control target key start
LH: loop header
LB: loop body
LE: loop exit
PB: predicated region body
PF: predicated region fallthrough
CT: control target
= control target key end

     0   :  { %s138_s0 = inlined_call_operand.vmem [shape: f32[16,128], index: 0, kind: input, shape index: {}]   ;;  %s139_s1 = inlined_call_operand.vmem [shape: f32[16,128], index: 1, kind: input, shape index: {}]   ;;  %s140_s2 = inlined_call_operand.vmem [shape: f32[1,8,128], index: 2, kind: output, shape index: {0}]   ;;  %s141_s3 = inlined_call_operand.vmem [shape: f32[1,8,128], index: 3, kind: output, shape index: {1}]  }
   0x1   :  { %v63_v0 = vld [vmem:[%s138_s0] sm:$0xff]  ;;  %v64_v1 = vld [vmem:[%s138_s0 + $0x8] sm:$0xff] }
   0x2   :  { %v65_v2 = vld [vmem:[%s139_s1] sm:$0xff]  ;;  %v66_v3 = vld [vmem:[%s139_s1 + $0x8] sm:$0xff] }
   0x3   :  { %v67_v4 = vadd.f32 %v65_v2, %v63_v0  ;;  %v69_v5 = vmul.f32 %v65_v2, %v63_v0  ;;  %v68_v6 = vadd.f32 %v66_v3, %v64_v1  ;;  %v70_v7 = vmul.f32 %v66_v3, %v64_v1 }
   0x5   :  { %v72_v8 = vadd.f32 %v68_v6, %v67_v4  ;;  %v76_v9 = vadd.f32 %v70_v7, %v69_v5 }
   0x7   :  { %74 = vst [vmem:[%s140_s2] sm:$0xff] %v72_v8  ;;  %78 = vst [vmem:[%s141_s3] sm:$0xff] %v76_v9 }

</bundles_post_ra>
